<compile_context>
chip_gen: v5e
topology: v5e:2x2
jax: 0.10.0
libtpu: 0.0.40
codegen_flags: <defaults>
</compile_context>

<pallas_src>
import functools

import jax
import jax.numpy as jnp
from jax.experimental import pallas as pl
from jax.experimental.pallas import tpu as pltpu

_LANE = 128     # lane width: last block dim should be a multiple of this (or full dim)
_SUBLANE = 8    # sublane granularity for the second-to-last block dim


def _round_up(x, n):
    return ((x + n - 1) // n) * n


def _tpu_info():
    try:
        return pltpu.get_tpu_info()
    except Exception:
        return None


def _vmem_budget_bytes():
    """Usable VMEM budget with headroom (64 MiB/TC on v7x, 128 MiB on v5e/v6e)."""
    info = _tpu_info()
    cap = getattr(info, "vmem_capacity_bytes", None) if info is not None else None
    if not cap:
        cap = 64 * 1024 * 1024  # conservative default: v7x per-TensorCore capacity
    return min((int(cap) * 3) // 4, 96 * 1024 * 1024)


def _num_tensorcores():
    """Best-effort TensorCores-per-chip (2 on v7x, 1 on v5e/v6e); 1 if unknown."""
    info = _tpu_info()
    for attr in ("num_cores", "num_tensorcores", "tensorcore_count", "core_count"):
        v = getattr(info, attr, None) if info is not None else None
        if isinstance(v, int) and 0 < v <= 8:
            return min(v, 4)
    try:
        v = getattr(jax.devices()[0], "num_cores", None)
        if isinstance(v, int) and 0 < v <= 8:
            return min(v, 4)
    except Exception:
        pass
    return 1


# --------------------------------------------------------------------------- kernels

def _mlp_kernel(x_ref, w1_ref, b1_ref, w2_ref, b2_ref, o_ref):
    """Fused relu(x @ W1 + b1) @ W2 + b2 with f32 MXU accumulation."""
    h = jnp.dot(x_ref[...], w1_ref[...], preferred_element_type=jnp.float32)
    h = jnp.maximum(h + b1_ref[...], 0.0)
    out = jnp.dot(h.astype(w2_ref.dtype), w2_ref[...],
                  preferred_element_type=jnp.float32)
    o_ref[...] = (out + b2_ref[...]).astype(o_ref.dtype)


def _mlp_kernel_ktiled(x_ref, w1_ref, b1_ref, w2_ref, b2_ref, o_ref, h_acc):
    """Same math, with the first matmul's contraction (D_in) tiled over a reduction
    grid axis and accumulated into an f32 VMEM scratch; bias/ReLU/second matmul are
    applied only after full accumulation."""
    k = pl.program_id(1)

    @pl.when(k == 0)
    def _():
        h_acc[...] = jnp.zeros_like(h_acc)

    h_acc[...] += jnp.dot(x_ref[...], w1_ref[...],
                          preferred_element_type=jnp.float32)

    @pl.when(k == pl.num_programs(1) - 1)
    def _():
        h = jnp.maximum(h_acc[...] + b1_ref[...], 0.0)
        out = jnp.dot(h.astype(w2_ref.dtype), w2_ref[...],
                      preferred_element_type=jnp.float32)
        o_ref[...] = (out + b2_ref[...]).astype(o_ref.dtype)


# ---------------------------------------------------------------- parameter prep (once)

def prepare_params(w1, b1, w2, b2, *, compute_dtype=None):
    """One-time parameter preparation (hoisted out of the per-call forward):
    bias reshape to (1, dim), optional bf16 cast of the weight matrices, and
    lane-dense padding of the output dim only when it is wide and misaligned.
    Biases stay f32 (they are added to the f32 accumulator). Returns (params, d_out)."""
    hid = w1.shape[1]
    d_out = w2.shape[1]
    b1 = jnp.asarray(b1).reshape(1, hid).astype(jnp.float32)
    b2 = jnp.asarray(b2).reshape(1, d_out).astype(jnp.float32)
    if compute_dtype is not None:
        w1 = w1.astype(compute_dtype)
        w2 = w2.astype(compute_dtype)
    # Tiny d_out stays unpadded (full-dim out block is legal); padding 16 -> 128 would
    # inflate output writes 8x and add a slice pass in a memory-bound kernel.
    if d_out >= _LANE and d_out % _LANE != 0:
        n_out = _round_up(d_out, _LANE)
        w2 = jnp.pad(w2, ((0, 0), (0, n_out - d_out)))
        b2 = jnp.pad(b2, ((0, 0), (0, n_out - d_out)))
    return (w1, b1, w2, b2), d_out


# ---------------------------------------------------------------------------- forward

@functools.partial(
    jax.jit,
    static_argnames=("d_out", "block_m", "block_n", "block_k",
                     "max_resident_w1_bytes", "out_dtype"),
)
def bce_forward_prepared(x, params, *, d_out, block_m=512, block_n=1024,
                         block_k=1024, max_resident_w1_bytes=None, out_dtype=None):
    """x: [..., D_in]; params from prepare_params(). Returns logits [..., d_out]
    (no sigmoid, matching the module)."""
    w1, b1, w2, b2 = params
    orig_shape = x.shape
    d_in = orig_shape[-1]
    hid = w1.shape[1]
    n_out = w2.shape[1]
    out_dt = jnp.dtype(out_dtype) if out_dtype is not None else x.dtype

    # Match the compute dtype chosen at prepare time (e.g. bf16). Feeding bf16
    # activations directly avoids this convert pass entirely.
    if x.dtype != w1.dtype:
        x = x.astype(w1.dtype)
    x2d = x.reshape(-1, d_in)
    m = x2d.shape[0]

    vmem_budget = _vmem_budget_bytes()
    cores = _num_tensorcores()
    if max_resident_w1_bytes is None:
        # Generation-aware resident-W1 threshold: ~1/3 of the usable VMEM budget
        # (16 MiB on v7x's 48 MiB budget, 32 MiB on v5e/v6e's 96 MiB).
        max_resident_w1_bytes = vmem_budget // 3

    x_isz = x2d.dtype.itemsize
    o_isz = jnp.dtype(out_dt).itemsize
    w_isz = w1.dtype.itemsize
    b_isz = b1.dtype.itemsize

    def choose_tm(per_row_bytes, resident_bytes, cap):
        if m <= _SUBLANE:
            return m
        avail = max(vmem_budget - resident_bytes - (4 << 20),
                    per_row_bytes * _SUBLANE)
        tm = min(cap, max(_SUBLANE, avail // per_row_bytes), m)
        # Only multi-TensorCore chips (v7x) need the row axis split: require >= 2 row
        # tiles per core so each core still pipelines. Single-core v5e/v6e keep the
        # full VMEM-budgeted tile (bigger tile -> closer to HBM roofline).
        if cores > 1:
            tm = min(tm, max(_SUBLANE, _round_up(pl.cdiv(m, 2 * cores), _SUBLANE)))
        return max(_SUBLANE, (tm // _SUBLANE) * _SUBLANE)

    k_tiled = d_in * hid * w_isz > max_resident_w1_bytes

    if not k_tiled:
        # ---- fast path: W1 resident in VMEM; optionally tile the output (N) axis ----
        use_n = n_out > block_n          # wide outputs: tile N so tm stays large
        tn = block_n if use_n else n_out
        gn = pl.cdiv(n_out, tn)
        w2_buf = 2 if use_n else 1
        resident = (d_in * hid * w_isz + hid * b_isz
                    + w2_buf * (hid * tn * w_isz + tn * b_isz))
        per_row = 2 * d_in * x_isz + 2 * tn * o_isz + (hid + tn) * 4
        tm = choose_tm(per_row, resident, block_m)
        gm = pl.cdiv(m, tm)

        def _const(shape):   # grid-invariant block: fetched once, single-buffered
            return pl.BlockSpec(shape, lambda i, j: (0, 0),
                                pipeline_mode=pl.Buffered(1))

        if use_n:
            w2_spec = pl.BlockSpec((hid, tn), lambda i, j: (0, j))
            b2_spec = pl.BlockSpec((1, tn), lambda i, j: (0, j))
        else:
            w2_spec = _const((hid, tn))
            b2_spec = _const((1, tn))

        cost = pl.CostEstimate(
            flops=2 * m * d_in * hid * gn + 2 * m * hid * n_out,
            transcendentals=0,
            bytes_accessed=(m * d_in * x_isz + m * n_out * o_isz
                            + (d_in * hid + hid * n_out) * w_isz
                            + (hid + n_out) * b_isz),
        )

        out = pl.pallas_call(
            _mlp_kernel,
            out_shape=jax.ShapeDtypeStruct((m, n_out), out_dt),
            grid_spec=pltpu.PrefetchScalarGridSpec(
                num_scalar_prefetch=0,
                grid=(gm, gn),
                in_specs=[
                    pl.BlockSpec((tm, d_in), lambda i, j: (i, 0)),
                    _const((d_in, hid)),
                    _const((1, hid)),
                    w2_spec,
                    b2_spec,
                ],
                out_specs=pl.BlockSpec((tm, tn), lambda i, j: (i, j)),
            ),
            compiler_params=pltpu.CompilerParams(
                dimension_semantics=("parallel", "parallel"),
                vmem_limit_bytes=int(vmem_budget),
            ),
            cost_estimate=cost,
        )(x2d, w1, b1, w2, b2)
    else:
        # ---- fallback: W1 too large to keep resident -> tile the D_in contraction ----
        # tk: multiple of 128, preferring one that divides D_in so no padding is needed.
        cap_k = max(_LANE, (min(block_k, _round_up(d_in, _LANE)) // _LANE) * _LANE)
        tk = _LANE
        t = cap_k
        while t >= _LANE:
            if d_in % t == 0:
                tk = t
                break
            t -= _LANE
        dk = _round_up(d_in, tk)
        if dk != d_in:
            # D_in not a multiple of 128: zero-pad the contraction (numerically exact).
            x2d = jnp.pad(x2d, ((0, 0), (0, dk - d_in)))
            w1 = jnp.pad(w1, ((0, dk - d_in), (0, 0)))
        gk = dk // tk

        resident = (2 * tk * hid * w_isz + hid * n_out * w_isz
                    + (hid + n_out) * b_isz)
        per_row = 2 * tk * x_isz + 2 * n_out * o_isz + (2 * hid + n_out) * 4
        # tm is the only lever on W1 re-read traffic (the full W1 streams from HBM
        # once per row tile) -> push it as large as the VMEM budget allows.
        tm = choose_tm(per_row, resident, max(block_m, 4096))
        gm = pl.cdiv(m, tm)

        def _constk(shape):
            return pl.BlockSpec(shape, lambda i, k: (0, 0),
                                pipeline_mode=pl.Buffered(1))

        cost = pl.CostEstimate(
            flops=2 * m * dk * hid + 2 * m * hid * n_out,
            transcendentals=0,
            bytes_accessed=(m * dk * x_isz + m * n_out * o_isz
                            + gm * dk * hid * w_isz       # W1 re-read once per row tile
                            + hid * n_out * w_isz + (hid + n_out) * b_isz),
        )

        # TODO(synk): if both D_in and d_out are huge, add an N-tiling axis here too.
        out = pl.pallas_call(
            _mlp_kernel_ktiled,
            out_shape=jax.ShapeDtypeStruct((m, n_out), out_dt),
            grid_spec=pltpu.PrefetchScalarGridSpec(
                num_scalar_prefetch=0,
                grid=(gm, gk),
                in_specs=[
                    pl.BlockSpec((tm, tk), lambda i, k: (i, k)),
                    pl.BlockSpec((tk, hid), lambda i, k: (k, 0)),
                    _constk((1, hid)),
                    _constk((hid, n_out)),
                    _constk((1, n_out)),
                ],
                out_specs=pl.BlockSpec((tm, n_out), lambda i, k: (i, 0)),
                scratch_shapes=[pltpu.VMEM((tm, hid), jnp.float32)],
            ),
            compiler_params=pltpu.CompilerParams(
                dimension_semantics=("parallel", "arbitrary"),
                vmem_limit_bytes=int(vmem_budget),
            ),
            cost_estimate=cost,
        )(x2d, w1, b1, w2, b2)

    if n_out != d_out:
        out = out[:, :d_out]
    return out.reshape(*orig_shape[:-1], d_out)


def bce_reconstructor_forward(x, w1, b1, w2, b2, *, compute_dtype=None, **kwargs):
    """One-shot convenience wrapper (prep + forward). For repeated inference, call
    prepare_params() once and reuse bce_forward_prepared()."""
    params, d_out = prepare_params(w1, b1, w2, b2, compute_dtype=compute_dtype)
    return bce_forward_prepared(x, params, d_out=d_out, **kwargs)


def init_params(key, input_size, output_size, hidden_size=128, dtype=jnp.float32):
    """Deterministic init mimicking nn.Linear's U(-1/sqrt(fan_in), 1/sqrt(fan_in))."""
    k1, k2, k3, k4 = jax.random.split(key, 4)
    bound1 = 1.0 / jnp.sqrt(input_size)
    bound2 = 1.0 / jnp.sqrt(hidden_size)
    w1 = jax.random.uniform(k1, (input_size, hidden_size), dtype, -bound1, bound1)
    b1 = jax.random.uniform(k2, (1, hidden_size), dtype, -bound1, bound1)
    w2 = jax.random.uniform(k3, (hidden_size, output_size), dtype, -bound2, bound2)
    b2 = jax.random.uniform(k4, (1, output_size), dtype, -bound2, bound2)
    return w1, b1, w2, b2


if __name__ == "__main__":
    key = jax.random.PRNGKey(0)
    kx, kp, kx2, kp2, kx3, kp3 = jax.random.split(key, 6)

    # Small shapes consistent with the module: batch=2, seq=8, input_size=32,
    # hidden_size=32, output_size=16 (tiny d_out -> unpadded, full-dim out block).
    batch, seq, d_in, hid, d_out = 2, 8, 32, 32, 16
    x = jax.random.normal(kx, (batch, seq, d_in), dtype=jnp.float32)
    w1, b1, w2, b2 = init_params(kp, d_in, d_out, hid)
    ref = jnp.maximum(x @ w1 + b1[0], 0.0) @ w2 + b2[0]

    # 1) f32 resident-weights fast path (exact semantics of the torch module).
    params, dd = prepare_params(w1, b1, w2, b2)
    out = jax.block_until_ready(bce_forward_prepared(x, params, d_out=dd))
    assert out.shape == (batch, seq, d_out)
    assert jnp.allclose(out, ref, atol=1e-5, rtol=1e-5)

    # 2) bf16 compute path (halves HBM traffic; f32 accumulation kept in-kernel).
    params_bf16, dd = prepare_params(w1, b1, w2, b2, compute_dtype=jnp.bfloat16)
    out_bf16 = jax.block_until_ready(bce_forward_prepared(x, params_bf16, d_out=dd))
    assert out_bf16.shape == (batch, seq, d_out)
    assert jnp.allclose(out_bf16, ref, atol=5e-2, rtol=5e-2)

    # 3) K-tiled fallback path (forced via a tiny resident-W1 threshold).
    d_in2 = 256
    x2 = jax.random.normal(kx2, (batch, seq, d_in2), dtype=jnp.float32)
    w1b, b1b, w2b, b2b = init_params(kp2, d_in2, d_out, hid)
    out2 = jax.block_until_ready(
        bce_reconstructor_forward(x2, w1b, b1b, w2b, b2b,
                                  block_k=128, max_resident_w1_bytes=0))
    ref2 = jnp.maximum(x2 @ w1b + b1b[0], 0.0) @ w2b + b2b[0]
    assert out2.shape == (batch, seq, d_out)
    assert jnp.allclose(out2, ref2, atol=1e-4, rtol=1e-4)

    # 4) N-tiled wide-output path (forced via a small block_n).
    d_out3 = 256
    x3 = jax.random.normal(kx3, (batch, seq, d_in), dtype=jnp.float32)
    w1c, b1c, w2c, b2c = init_params(kp3, d_in, d_out3, hid)
    out3 = jax.block_until_ready(
        bce_reconstructor_forward(x3, w1c, b1c, w2c, b2c, block_n=128))
    ref3 = jnp.maximum(x3 @ w1c + b1c[0], 0.0) @ w2c + b2c[0]
    assert out3.shape == (batch, seq, d_out3)
    assert jnp.allclose(out3, ref3, atol=1e-4, rtol=1e-4)

    print("KERNEL_OK")
</pallas_src>

<mosaic_0001>
module attributes {stable_mosaic.version = 11 : i64} {
  func.func @_mlp_kernel(%arg0: i32, %arg1: i32, %arg2: memref<16x32xf32, #tpu.memory_space<vmem>>, %arg3: memref<32x32xf32, #tpu.memory_space<vmem>>, %arg4: memref<1x32xf32, #tpu.memory_space<vmem>>, %arg5: memref<32x16xf32, #tpu.memory_space<vmem>>, %arg6: memref<1x16xf32, #tpu.memory_space<vmem>>, %arg7: memref<16x16xf32, #tpu.memory_space<vmem>>) attributes {dimension_semantics = [#tpu.dimension_semantics<parallel>, #tpu.dimension_semantics<parallel>], iteration_bounds = array<i64: 1, 1>, scalar_prefetch = 0 : i64, scratch_operands = 0 : i64, tpu.core_type = #tpu.core_type<tc>, window_params = [{transform_indices = @transform_0, window_bounds = array<i64: 16, 32>}, {pipeline_mode = #tpu.pipeline_mode<synchronous>, transform_indices = @transform_1, window_bounds = array<i64: 32, 32>}, {pipeline_mode = #tpu.pipeline_mode<synchronous>, transform_indices = @transform_2, window_bounds = array<i64: 1, 32>}, {pipeline_mode = #tpu.pipeline_mode<synchronous>, transform_indices = @transform_3, window_bounds = array<i64: 32, 16>}, {pipeline_mode = #tpu.pipeline_mode<synchronous>, transform_indices = @transform_4, window_bounds = array<i64: 1, 16>}, {transform_indices = @transform_5, window_bounds = array<i64: 16, 16>}]} {
    %c0 = arith.constant 0 : index
    %c0_0 = arith.constant 0 : index
    %0 = vector.load %arg2[%c0, %c0_0] : memref<16x32xf32, #tpu.memory_space<vmem>>, vector<16x32xf32>
    %c0_1 = arith.constant 0 : index
    %c0_2 = arith.constant 0 : index
    %1 = vector.load %arg3[%c0_1, %c0_2] : memref<32x32xf32, #tpu.memory_space<vmem>>, vector<32x32xf32>
    %cst = arith.constant dense<0.000000e+00> : vector<16x32xf32>
    %2 = tpu.matmul %0, %1, %cst {dimension_numbers = #tpu.dot_dimension_numbers<[1], [0], [0], [1], [0, 0, 1, 1], [], []>} : vector<16x32xf32>, vector<32x32xf32>, vector<16x32xf32> -> vector<16x32xf32>
    %c0_3 = arith.constant 0 : index
    %c0_4 = arith.constant 0 : index
    %3 = vector.load %arg4[%c0_3, %c0_4] : memref<1x32xf32, #tpu.memory_space<vmem>>, vector<1x32xf32>
    %4 = vector.broadcast %3 : vector<1x32xf32> to vector<16x32xf32>
    %5 = arith.addf %2, %4 : vector<16x32xf32>
    %cst_5 = arith.constant 0.000000e+00 : f32
    %6 = vector.broadcast %cst_5 : f32 to vector<16x32xf32>
    %7 = arith.maximumf %5, %6 : vector<16x32xf32>
    %c0_6 = arith.constant 0 : index
    %c0_7 = arith.constant 0 : index
    %8 = vector.load %arg5[%c0_6, %c0_7] : memref<32x16xf32, #tpu.memory_space<vmem>>, vector<32x16xf32>
    %cst_8 = arith.constant dense<0.000000e+00> : vector<16x16xf32>
    %9 = tpu.matmul %7, %8, %cst_8 {dimension_numbers = #tpu.dot_dimension_numbers<[1], [0], [0], [1], [0, 0, 1, 1], [], []>} : vector<16x32xf32>, vector<32x16xf32>, vector<16x16xf32> -> vector<16x16xf32>
    %c0_9 = arith.constant 0 : index
    %c0_10 = arith.constant 0 : index
    %10 = vector.load %arg6[%c0_9, %c0_10] : memref<1x16xf32, #tpu.memory_space<vmem>>, vector<1x16xf32>
    %11 = vector.broadcast %10 : vector<1x16xf32> to vector<16x16xf32>
    %12 = arith.addf %9, %11 : vector<16x16xf32>
    %c0_11 = arith.constant 0 : index
    %c0_12 = arith.constant 0 : index
    %13 = vector.load %arg7[%c0_11, %c0_12] : memref<16x16xf32, #tpu.memory_space<vmem>>, vector<16x16xf32>
    tpu.vector_store %arg7[%c0_11, %c0_12], %12 {strides = array<i32>} : memref<16x16xf32, #tpu.memory_space<vmem>>, vector<16x16xf32>,
    return
  }
  func.func @transform_0(%arg0: i32, %arg1: i32) -> (i32, i32) {
    %c0_i32 = arith.constant 0 : i32
    %c0_i32_0 = arith.constant 0 : i32
    return %arg0, %c0_i32 : i32, i32
  }
  func.func @transform_1(%arg0: i32, %arg1: i32) -> (i32, i32) {
    %c0_i32 = arith.constant 0 : i32
    %c0_i32_0 = arith.constant 0 : i32
    %c0_i32_1 = arith.constant 0 : i32
    return %c0_i32, %c0_i32_0 : i32, i32
  }
  func.func @transform_2(%arg0: i32, %arg1: i32) -> (i32, i32) {
    %c0_i32 = arith.constant 0 : i32
    %c0_i32_0 = arith.constant 0 : i32
    %c0_i32_1 = arith.constant 0 : i32
    return %c0_i32, %c0_i32_0 : i32, i32
  }
  func.func @transform_3(%arg0: i32, %arg1: i32) -> (i32, i32) {
    %c0_i32 = arith.constant 0 : i32
    %c0_i32_0 = arith.constant 0 : i32
    %c0_i32_1 = arith.constant 0 : i32
    return %c0_i32, %c0_i32_0 : i32, i32
  }
  func.func @transform_4(%arg0: i32, %arg1: i32) -> (i32, i32) {
    %c0_i32 = arith.constant 0 : i32
    %c0_i32_0 = arith.constant 0 : i32
    %c0_i32_1 = arith.constant 0 : i32
    return %c0_i32, %c0_i32_0 : i32, i32
  }
  func.func @transform_5(%arg0: i32, %arg1: i32) -> (i32, i32) {
    %c0_i32 = arith.constant 0 : i32
    return %arg0, %arg1 : i32, i32
  }
}

</mosaic_0001>

<bundles_post_ra>
// kernel: bce_forward_prepared.1
= control target key start
LH: loop header
LB: loop body
LE: loop exit
PB: predicated region body
PF: predicated region fallthrough
CT: control target
= control target key end

     0   :  { %s240_s0 = inlined_call_operand.vmem [shape: f32[16,32], index: 0, kind: input, shape index: {}]   ;;  %s241_s1 = inlined_call_operand.vmem [shape: f32[32,32], index: 1, kind: input, shape index: {}]   ;;  %s242_s2 = inlined_call_operand.vmem [shape: f32[1,32], index: 2, kind: input, shape index: {}]   ;;  %s243_s3 = inlined_call_operand.vmem [shape: f32[32,16], index: 3, kind: input, shape index: {}]   ;;  %s244_s4 = inlined_call_operand.vmem [shape: f32[1,16], index: 4, kind: input, shape index: {}]   ;;  %s245_s5 = inlined_call_operand.hbm [shape: f32[16,16], index: 5, kind: output, shape index: {}]  }
   0x1   :  { %v26_v0 = vld [vmem:[%s241_s1 + $0x18] sm:$0xff]  ;;  %v25_v1 = vld [vmem:[%s241_s1 + $0x10] sm:$0xff]  ;;  %v24_v2 = vld [vmem:[%s241_s1 + $0x8] sm:$0xff] }
   0x2   :  { %125 = vmatpush.msra.mxu2 %v26_v0  ;;  %50 = vmatpush.msra.mxu0 %v26_v0  ;;  %v66_v3 = vld [vmem:[%s243_s3 + $0x18] sm:$0xff] }
   0x4   :  { %126 = vmatpush.msra.mxu2 %v25_v1  ;;  %51 = vmatpush.msra.mxu0 %v25_v1 }
   0x5   :  { %10 = vsyncpa [#allocation3], 0  ;;  %v23_v4 = vld [vmem:[%s241_s1] sm:$0xff]  ;;  %129 = vmatpush.msra.mxu3 %v66_v3  ;;  %89 = vmatpush.msra.mxu1 %v66_v3  ;;  %v22_v5 = vld [vmem:[%s240_s0 + $0x8] sm:$0xff]  ;;  %vm31_vm0 = vcmask 261120   ;;  %vm100_vm1 = vcmask 130048  }
   0x6   :  { %127 = vmatpush.msra.mxu2 %v24_v2  ;;  %52 = vmatpush.msra.mxu0 %v24_v2  ;;  %v21_v6 = vld [vmem:[%s240_s0] sm:$0xff]  ;;  %v65_v7 = vld [vmem:[%s243_s3 + $0x10] sm:$0xff]  ;;  %v64_v8 = vld [vmem:[%s243_s3 + $0x8] sm:$0xff]  ;;  %s109_s17 = sshll.u32 %s245_s5, 4  ;;  %s165_s18 = smov 128   ;;  %s110_s17 = int_to_ptr.hbm [resolvable:$true] %s109_s17 }
   0x7   :  { %130 = vmatpush.msra.mxu3 %v65_v7  ;;  %90 = vmatpush.msra.mxu1 %v65_v7  ;;  %v63_v9 = vld [vmem:[%s243_s3] sm:$0xff]  ;;  %s164_s3 = smov [#allocation2]   ;;  %s166_s19 = smov 8  }
   0x8   :  { %128 = vmatpush.msra.mxu2 %v23_v4  ;;  %53 = vmatpush.msra.mxu0 %v23_v4  ;;  %v136_v10 = vld [vmem:[%s242_s2] ss:$0 sm:$0xff]  ;;  %s107_s2 = sshll.u32 %s164_s3, 4  ;;  %s108_s2 = int_to_ptr.vmem [resolvable:$true] %s107_s2 }
   0x9   :  { %122 = vmatmul.msk.f32.vlgmr.msra.gmra.mxu2 %vm31_vm0, %v22_v5  ;;  %121 = vmatmul.msk.f32.vlgmr.msra.gmra.mxu0 %vm31_vm0, %v21_v6  ;;  %v137_v17 = vld [vmem:[%s244_s4] ss:$0 sm:$0xff] }
   0xa   :  { %131 = vmatpush.msra.mxu3 %v64_v8  ;;  %91 = vmatpush.msra.mxu1 %v64_v8 }
   0xc   :  { %132 = vmatpush.msra.mxu3 %v63_v9  ;;  %92 = vmatpush.msra.mxu1 %v63_v9 }
  0x86   :  { %v55_v11 = vpop.f32.mrf.mxu0 }
  0x87   :  { %v56_v12 = vadd.f32 %v136_v10, %v55_v11 }
  0x89   :  { %v61_v13 = vmax.f32 %v56_v12, 0.0 }
  0x8b   :  { %123 = vmatmul.msk.f32.vlgmr.msra.gmra.mxu1 %vm31_vm0, %v61_v13 }
  0x8c   :  { %v58_v14 = vpop.f32.mrf.mxu2 }
  0x8d   :  { %v59_v15 = vadd.f32 %v136_v10, %v58_v14 }
  0x8f   :  { %v62_v16 = vmax.f32 %v59_v15, 0.0 }
  0x91   :  { %124 = vmatmul.msk.f32.vlgmr.msra.gmra.mxu3 %vm31_vm0, %v62_v16 }
 0x108   :  { %v94_v18 = vpop.f32.mrf.mxu1 }
 0x109   :  { %v95_v19 = vadd.f32 %v137_v17, %v94_v18 }
 0x10b   :  { %101 = vst.msk [vmem:[#allocation2] sm:$0xff] %vm100_vm1, %v95_v19 }
 0x114   :  { %v97_v20 = vpop.f32.mrf.mxu3 }
 0x115   :  { %v98_v21 = vadd.f32 %v137_v17, %v97_v20 }
 0x117   :  { %102 = vst.msk [vmem:[#allocation2 + $0x8] sm:$0xff] %vm100_vm1, %v98_v21 }
 0x118   :  { %115 = dma.vmem_to_hbm [thread:$0]  %s108_s2, 256, %s110_s17, [#allocation3], %s165_s18, %s165_s18, %s166_s19  }
 0x119   :  { %162 = dma.done.wait [#allocation3], 256  }
 0x11a   :  { %163 = vsyncadd [#allocation3], 4294967040 }
 0x11b   :  { %120 = vsyncpa [#allocation3], 1 }

</bundles_post_ra>
